<compile_context>
chip_gen: v7x
topology: tpu7x:2x2x1
jax: 0.10.0
libtpu: 0.0.40
codegen_flags: <defaults>
</compile_context>

<pallas_src>
import jax
import jax.numpy as jnp
from jax.experimental import pallas as pl
from jax.experimental.pallas import tpu as pltpu


def spn_kernel(x_ref, w_ref, b_ref, out_ref):
    # x_ref:   (tile, D)      one row-tile of the (non-duplicated) batch
    # w_ref:   (L, D, D)      packed weights (in_features, out_features), zero-padded
    # b_ref:   (L, 1, D)      packed biases, zero-padded
    # out_ref: (2, tile, D)   both batch copies of the output
    h = x_ref[...]
    n_layers = w_ref.shape[0]
    for i in range(n_layers):               # static unroll: 8 dependent MXU pushes
        w = w_ref[i]                        # (D, D)
        b = b_ref[i]                        # (1, D)
        h = jnp.dot(h, w, preferred_element_type=jnp.float32) + b
        h = jnp.maximum(h, 0.0)             # ReLU after every layer, incl. the last
    h = h.astype(out_ref.dtype)
    # torch.cat((x, x), 0) => both output halves are identical; write twice.
    out_ref[0] = h
    out_ref[1] = h


def pack_params(params, d):
    """Zero-pad every (W, b) to (d, d) / (1, d) and stack into two arrays."""
    n = len(params)
    wp = jnp.zeros((n, d, d), jnp.float32)
    bp = jnp.zeros((n, 1, d), jnp.float32)
    for i, (w, b) in enumerate(params):
        wp = wp.at[i, : w.shape[0], : w.shape[1]].set(w)
        bp = bp.at[i, :, : b.shape[1]].set(b)
    return wp, bp


def spn_forward(x, params, *, max_tile_rows=512):
    """x: (B, input_size) f32; params: list of (W (in,out), b (1,out)). Returns (2B, num_classes)."""
    b_rows, in_dim = x.shape
    n_layers = len(params)
    dims = [params[0][0].shape[0]] + [w.shape[1] for w, _ in params]
    num_classes = dims[-1]
    d = max(dims)  # common padded feature width (32 here)

    wp, bp = pack_params(params, d)

    # Pad batch rows to a sublane multiple and pick a row tile.
    b_pad = max(8, -(-b_rows // 8) * 8)
    tile = min(max_tile_rows, b_pad)
    b_pad = -(-b_pad // tile) * tile  # make tile divide b_pad exactly
    xp = jnp.zeros((b_pad, d), jnp.float32).at[:b_rows, :in_dim].set(x)

    grid = (b_pad // tile,)
    out3 = pl.pallas_call(
        spn_kernel,
        out_shape=jax.ShapeDtypeStruct((2, b_pad, d), jnp.float32),
        grid_spec=pltpu.PrefetchScalarGridSpec(
            num_scalar_prefetch=0,
            grid=grid,
            in_specs=[
                pl.BlockSpec((tile, d), lambda i: (i, 0)),          # x row-tile
                pl.BlockSpec((n_layers, d, d), lambda i: (0, 0, 0)),  # all weights, resident
                pl.BlockSpec((n_layers, 1, d), lambda i: (0, 0, 0)),  # all biases, resident
            ],
            out_specs=pl.BlockSpec((2, tile, d), lambda i: (0, i, 0)),
        ),
        compiler_params=pltpu.CompilerParams(
            dimension_semantics=("parallel",),
        ),
    )(xp, wp, bp)

    # Duplicated copies are out3[0] (rows 0..B-1) and out3[1] (rows B..2B-1);
    # strip batch/feature padding and flatten to (2B, num_classes).
    return out3[:, :b_rows, :num_classes].reshape(2 * b_rows, num_classes)


def init_params(key, input_size, hidden_size, num_classes):
    """Shapes match the PyTorch module; weights stored transposed as (in, out).

    Weights: kaiming_normal_ (fan_in, gain sqrt(2)).  Biases: nn.Linear default
    U(-1/sqrt(fan_in), 1/sqrt(fan_in)).
    """
    dims = [input_size] + [hidden_size] * 7 + [num_classes]
    params = []
    for i in range(8):
        fan_in, fan_out = dims[i], dims[i + 1]
        key, kw, kb = jax.random.split(key, 3)
        std = (2.0 / fan_in) ** 0.5
        w = std * jax.random.normal(kw, (fan_in, fan_out), dtype=jnp.float32)
        bound = 1.0 / (fan_in ** 0.5)
        b = jax.random.uniform(
            kb, (1, fan_out), minval=-bound, maxval=bound, dtype=jnp.float32
        )
        params.append((w, b))
    return params


def spn_reference(x, params):
    h = jnp.concatenate([x, x], axis=0)
    for w, b in params:
        h = jnp.maximum(jnp.dot(h, w) + b, 0.0)
    return h


if __name__ == "__main__":
    key = jax.random.PRNGKey(0)
    key, kx = jax.random.split(key)

    batch = 2
    input_size = 32
    hidden_size = 32
    num_classes = 8

    x = jax.random.normal(kx, (batch, input_size), dtype=jnp.float32)
    params = init_params(key, input_size, hidden_size, num_classes)

    out = spn_forward(x, params)
    out = jax.block_until_ready(out)

    ref = spn_reference(x, params)
    assert out.shape == (2 * batch, num_classes), out.shape
    assert jnp.allclose(out, ref, atol=1e-5, rtol=1e-5), "mismatch vs reference"

    print("KERNEL_OK")
</pallas_src>

<mosaic_0001>
module attributes {stable_mosaic.version = 11 : i64} {
  func.func @spn_kernel(%arg0: i32, %arg1: memref<8x32xf32, #tpu.memory_space<vmem>>, %arg2: memref<8x32x32xf32, #tpu.memory_space<vmem>>, %arg3: memref<8x1x32xf32, #tpu.memory_space<vmem>>, %arg4: memref<2x8x32xf32, #tpu.memory_space<vmem>>) attributes {dimension_semantics = [#tpu.dimension_semantics<parallel>], iteration_bounds = array<i64: 1>, scalar_prefetch = 0 : i64, scratch_operands = 0 : i64, tpu.core_type = #tpu.core_type<tc>, window_params = [{transform_indices = @transform_0, window_bounds = array<i64: 8, 32>}, {pipeline_mode = #tpu.pipeline_mode<synchronous>, transform_indices = @transform_1, window_bounds = array<i64: 8, 32, 32>}, {pipeline_mode = #tpu.pipeline_mode<synchronous>, transform_indices = @transform_2, window_bounds = array<i64: 8, 1, 32>}, {transform_indices = @transform_3, window_bounds = array<i64: 2, 8, 32>}]} {
    %c0 = arith.constant 0 : index
    %c0_0 = arith.constant 0 : index
    %0 = vector.load %arg1[%c0, %c0_0] : memref<8x32xf32, #tpu.memory_space<vmem>>, vector<8x32xf32>
    %c0_1 = arith.constant 0 : index
    %c0_2 = arith.constant 0 : index
    %c0_3 = arith.constant 0 : index
    %1 = vector.load %arg2[%c0_1, %c0_2, %c0_3] : memref<8x32x32xf32, #tpu.memory_space<vmem>>, vector<1x32x32xf32>
    %2 = vector.shape_cast %1 : vector<1x32x32xf32> to vector<32x32xf32>
    %c0_4 = arith.constant 0 : index
    %c0_5 = arith.constant 0 : index
    %c0_6 = arith.constant 0 : index
    %3 = vector.load %arg3[%c0_4, %c0_5, %c0_6] : memref<8x1x32xf32, #tpu.memory_space<vmem>>, vector<1x1x32xf32>
    %4 = vector.shape_cast %3 : vector<1x1x32xf32> to vector<1x32xf32>
    %cst = arith.constant dense<0.000000e+00> : vector<8x32xf32>
    %5 = tpu.matmul %0, %2, %cst {dimension_numbers = #tpu.dot_dimension_numbers<[1], [0], [0], [1], [0, 0, 1, 1], [], []>} : vector<8x32xf32>, vector<32x32xf32>, vector<8x32xf32> -> vector<8x32xf32>
    %6 = vector.broadcast %4 : vector<1x32xf32> to vector<8x32xf32>
    %7 = arith.addf %5, %6 : vector<8x32xf32>
    %cst_7 = arith.constant 0.000000e+00 : f32
    %8 = vector.broadcast %cst_7 : f32 to vector<8x32xf32>
    %9 = arith.maximumf %7, %8 : vector<8x32xf32>
    %c1 = arith.constant 1 : index
    %c0_8 = arith.constant 0 : index
    %c0_9 = arith.constant 0 : index
    %10 = vector.load %arg2[%c1, %c0_8, %c0_9] : memref<8x32x32xf32, #tpu.memory_space<vmem>>, vector<1x32x32xf32>
    %11 = vector.shape_cast %10 : vector<1x32x32xf32> to vector<32x32xf32>
    %c1_10 = arith.constant 1 : index
    %c0_11 = arith.constant 0 : index
    %c0_12 = arith.constant 0 : index
    %12 = vector.load %arg3[%c1_10, %c0_11, %c0_12] : memref<8x1x32xf32, #tpu.memory_space<vmem>>, vector<1x1x32xf32>
    %13 = vector.shape_cast %12 : vector<1x1x32xf32> to vector<1x32xf32>
    %cst_13 = arith.constant dense<0.000000e+00> : vector<8x32xf32>
    %14 = tpu.matmul %9, %11, %cst_13 {dimension_numbers = #tpu.dot_dimension_numbers<[1], [0], [0], [1], [0, 0, 1, 1], [], []>} : vector<8x32xf32>, vector<32x32xf32>, vector<8x32xf32> -> vector<8x32xf32>
    %15 = vector.broadcast %13 : vector<1x32xf32> to vector<8x32xf32>
    %16 = arith.addf %14, %15 : vector<8x32xf32>
    %cst_14 = arith.constant 0.000000e+00 : f32
    %17 = vector.broadcast %cst_14 : f32 to vector<8x32xf32>
    %18 = arith.maximumf %16, %17 : vector<8x32xf32>
    %c2 = arith.constant 2 : index
    %c0_15 = arith.constant 0 : index
    %c0_16 = arith.constant 0 : index
    %19 = vector.load %arg2[%c2, %c0_15, %c0_16] : memref<8x32x32xf32, #tpu.memory_space<vmem>>, vector<1x32x32xf32>
    %20 = vector.shape_cast %19 : vector<1x32x32xf32> to vector<32x32xf32>
    %c2_17 = arith.constant 2 : index
    %c0_18 = arith.constant 0 : index
    %c0_19 = arith.constant 0 : index
    %21 = vector.load %arg3[%c2_17, %c0_18, %c0_19] : memref<8x1x32xf32, #tpu.memory_space<vmem>>, vector<1x1x32xf32>
    %22 = vector.shape_cast %21 : vector<1x1x32xf32> to vector<1x32xf32>
    %cst_20 = arith.constant dense<0.000000e+00> : vector<8x32xf32>
    %23 = tpu.matmul %18, %20, %cst_20 {dimension_numbers = #tpu.dot_dimension_numbers<[1], [0], [0], [1], [0, 0, 1, 1], [], []>} : vector<8x32xf32>, vector<32x32xf32>, vector<8x32xf32> -> vector<8x32xf32>
    %24 = vector.broadcast %22 : vector<1x32xf32> to vector<8x32xf32>
    %25 = arith.addf %23, %24 : vector<8x32xf32>
    %cst_21 = arith.constant 0.000000e+00 : f32
    %26 = vector.broadcast %cst_21 : f32 to vector<8x32xf32>
    %27 = arith.maximumf %25, %26 : vector<8x32xf32>
    %c3 = arith.constant 3 : index
    %c0_22 = arith.constant 0 : index
    %c0_23 = arith.constant 0 : index
    %28 = vector.load %arg2[%c3, %c0_22, %c0_23] : memref<8x32x32xf32, #tpu.memory_space<vmem>>, vector<1x32x32xf32>
    %29 = vector.shape_cast %28 : vector<1x32x32xf32> to vector<32x32xf32>
    %c3_24 = arith.constant 3 : index
    %c0_25 = arith.constant 0 : index
    %c0_26 = arith.constant 0 : index
    %30 = vector.load %arg3[%c3_24, %c0_25, %c0_26] : memref<8x1x32xf32, #tpu.memory_space<vmem>>, vector<1x1x32xf32>
    %31 = vector.shape_cast %30 : vector<1x1x32xf32> to vector<1x32xf32>
    %cst_27 = arith.constant dense<0.000000e+00> : vector<8x32xf32>
    %32 = tpu.matmul %27, %29, %cst_27 {dimension_numbers = #tpu.dot_dimension_numbers<[1], [0], [0], [1], [0, 0, 1, 1], [], []>} : vector<8x32xf32>, vector<32x32xf32>, vector<8x32xf32> -> vector<8x32xf32>
    %33 = vector.broadcast %31 : vector<1x32xf32> to vector<8x32xf32>
    %34 = arith.addf %32, %33 : vector<8x32xf32>
    %cst_28 = arith.constant 0.000000e+00 : f32
    %35 = vector.broadcast %cst_28 : f32 to vector<8x32xf32>
    %36 = arith.maximumf %34, %35 : vector<8x32xf32>
    %c4 = arith.constant 4 : index
    %c0_29 = arith.constant 0 : index
    %c0_30 = arith.constant 0 : index
    %37 = vector.load %arg2[%c4, %c0_29, %c0_30] : memref<8x32x32xf32, #tpu.memory_space<vmem>>, vector<1x32x32xf32>
    %38 = vector.shape_cast %37 : vector<1x32x32xf32> to vector<32x32xf32>
    %c4_31 = arith.constant 4 : index
    %c0_32 = arith.constant 0 : index
    %c0_33 = arith.constant 0 : index
    %39 = vector.load %arg3[%c4_31, %c0_32, %c0_33] : memref<8x1x32xf32, #tpu.memory_space<vmem>>, vector<1x1x32xf32>
    %40 = vector.shape_cast %39 : vector<1x1x32xf32> to vector<1x32xf32>
    %cst_34 = arith.constant dense<0.000000e+00> : vector<8x32xf32>
    %41 = tpu.matmul %36, %38, %cst_34 {dimension_numbers = #tpu.dot_dimension_numbers<[1], [0], [0], [1], [0, 0, 1, 1], [], []>} : vector<8x32xf32>, vector<32x32xf32>, vector<8x32xf32> -> vector<8x32xf32>
    %42 = vector.broadcast %40 : vector<1x32xf32> to vector<8x32xf32>
    %43 = arith.addf %41, %42 : vector<8x32xf32>
    %cst_35 = arith.constant 0.000000e+00 : f32
    %44 = vector.broadcast %cst_35 : f32 to vector<8x32xf32>
    %45 = arith.maximumf %43, %44 : vector<8x32xf32>
    %c5 = arith.constant 5 : index
    %c0_36 = arith.constant 0 : index
    %c0_37 = arith.constant 0 : index
    %46 = vector.load %arg2[%c5, %c0_36, %c0_37] : memref<8x32x32xf32, #tpu.memory_space<vmem>>, vector<1x32x32xf32>
    %47 = vector.shape_cast %46 : vector<1x32x32xf32> to vector<32x32xf32>
    %c5_38 = arith.constant 5 : index
    %c0_39 = arith.constant 0 : index
    %c0_40 = arith.constant 0 : index
    %48 = vector.load %arg3[%c5_38, %c0_39, %c0_40] : memref<8x1x32xf32, #tpu.memory_space<vmem>>, vector<1x1x32xf32>
    %49 = vector.shape_cast %48 : vector<1x1x32xf32> to vector<1x32xf32>
    %cst_41 = arith.constant dense<0.000000e+00> : vector<8x32xf32>
    %50 = tpu.matmul %45, %47, %cst_41 {dimension_numbers = #tpu.dot_dimension_numbers<[1], [0], [0], [1], [0, 0, 1, 1], [], []>} : vector<8x32xf32>, vector<32x32xf32>, vector<8x32xf32> -> vector<8x32xf32>
    %51 = vector.broadcast %49 : vector<1x32xf32> to vector<8x32xf32>
    %52 = arith.addf %50, %51 : vector<8x32xf32>
    %cst_42 = arith.constant 0.000000e+00 : f32
    %53 = vector.broadcast %cst_42 : f32 to vector<8x32xf32>
    %54 = arith.maximumf %52, %53 : vector<8x32xf32>
    %c6 = arith.constant 6 : index
    %c0_43 = arith.constant 0 : index
    %c0_44 = arith.constant 0 : index
    %55 = vector.load %arg2[%c6, %c0_43, %c0_44] : memref<8x32x32xf32, #tpu.memory_space<vmem>>, vector<1x32x32xf32>
    %56 = vector.shape_cast %55 : vector<1x32x32xf32> to vector<32x32xf32>
    %c6_45 = arith.constant 6 : index
    %c0_46 = arith.constant 0 : index
    %c0_47 = arith.constant 0 : index
    %57 = vector.load %arg3[%c6_45, %c0_46, %c0_47] : memref<8x1x32xf32, #tpu.memory_space<vmem>>, vector<1x1x32xf32>
    %58 = vector.shape_cast %57 : vector<1x1x32xf32> to vector<1x32xf32>
    %cst_48 = arith.constant dense<0.000000e+00> : vector<8x32xf32>
    %59 = tpu.matmul %54, %56, %cst_48 {dimension_numbers = #tpu.dot_dimension_numbers<[1], [0], [0], [1], [0, 0, 1, 1], [], []>} : vector<8x32xf32>, vector<32x32xf32>, vector<8x32xf32> -> vector<8x32xf32>
    %60 = vector.broadcast %58 : vector<1x32xf32> to vector<8x32xf32>
    %61 = arith.addf %59, %60 : vector<8x32xf32>
    %cst_49 = arith.constant 0.000000e+00 : f32
    %62 = vector.broadcast %cst_49 : f32 to vector<8x32xf32>
    %63 = arith.maximumf %61, %62 : vector<8x32xf32>
    %c7 = arith.constant 7 : index
    %c0_50 = arith.constant 0 : index
    %c0_51 = arith.constant 0 : index
    %64 = vector.load %arg2[%c7, %c0_50, %c0_51] : memref<8x32x32xf32, #tpu.memory_space<vmem>>, vector<1x32x32xf32>
    %65 = vector.shape_cast %64 : vector<1x32x32xf32> to vector<32x32xf32>
    %c7_52 = arith.constant 7 : index
    %c0_53 = arith.constant 0 : index
    %c0_54 = arith.constant 0 : index
    %66 = vector.load %arg3[%c7_52, %c0_53, %c0_54] : memref<8x1x32xf32, #tpu.memory_space<vmem>>, vector<1x1x32xf32>
    %67 = vector.shape_cast %66 : vector<1x1x32xf32> to vector<1x32xf32>
    %cst_55 = arith.constant dense<0.000000e+00> : vector<8x32xf32>
    %68 = tpu.matmul %63, %65, %cst_55 {dimension_numbers = #tpu.dot_dimension_numbers<[1], [0], [0], [1], [0, 0, 1, 1], [], []>} : vector<8x32xf32>, vector<32x32xf32>, vector<8x32xf32> -> vector<8x32xf32>
    %69 = vector.broadcast %67 : vector<1x32xf32> to vector<8x32xf32>
    %70 = arith.addf %68, %69 : vector<8x32xf32>
    %cst_56 = arith.constant 0.000000e+00 : f32
    %71 = vector.broadcast %cst_56 : f32 to vector<8x32xf32>
    %72 = arith.maximumf %70, %71 : vector<8x32xf32>
    %c0_57 = arith.constant 0 : index
    %c0_58 = arith.constant 0 : index
    %c0_59 = arith.constant 0 : index
    %73 = vector.load %arg4[%c0_57, %c0_58, %c0_59] : memref<2x8x32xf32, #tpu.memory_space<vmem>>, vector<1x8x32xf32>
    %74 = vector.shape_cast %73 : vector<1x8x32xf32> to vector<8x32xf32>
    %75 = vector.shape_cast %72 : vector<8x32xf32> to vector<1x8x32xf32>
    tpu.vector_store %arg4[%c0_57, %c0_58, %c0_59], %75 {strides = array<i32>} : memref<2x8x32xf32, #tpu.memory_space<vmem>>, vector<1x8x32xf32>,
    %c1_60 = arith.constant 1 : index
    %c0_61 = arith.constant 0 : index
    %c0_62 = arith.constant 0 : index
    %76 = vector.load %arg4[%c1_60, %c0_61, %c0_62] : memref<2x8x32xf32, #tpu.memory_space<vmem>>, vector<1x8x32xf32>
    %77 = vector.shape_cast %76 : vector<1x8x32xf32> to vector<8x32xf32>
    %78 = vector.shape_cast %72 : vector<8x32xf32> to vector<1x8x32xf32>
    tpu.vector_store %arg4[%c1_60, %c0_61, %c0_62], %78 {strides = array<i32>} : memref<2x8x32xf32, #tpu.memory_space<vmem>>, vector<1x8x32xf32>,
    return
  }
  func.func @transform_0(%arg0: i32) -> (i32, i32) {
    %c0_i32 = arith.constant 0 : i32
    %c0_i32_0 = arith.constant 0 : i32
    return %arg0, %c0_i32 : i32, i32
  }
  func.func @transform_1(%arg0: i32) -> (i32, i32, i32) {
    %c0_i32 = arith.constant 0 : i32
    %c0_i32_0 = arith.constant 0 : i32
    %c0_i32_1 = arith.constant 0 : i32
    %c0_i32_2 = arith.constant 0 : i32
    return %c0_i32, %c0_i32_0, %c0_i32_1 : i32, i32, i32
  }
  func.func @transform_2(%arg0: i32) -> (i32, i32, i32) {
    %c0_i32 = arith.constant 0 : i32
    %c0_i32_0 = arith.constant 0 : i32
    %c0_i32_1 = arith.constant 0 : i32
    %c0_i32_2 = arith.constant 0 : i32
    return %c0_i32, %c0_i32_0, %c0_i32_1 : i32, i32, i32
  }
  func.func @transform_3(%arg0: i32) -> (i32, i32, i32) {
    %c0_i32 = arith.constant 0 : i32
    %c0_i32_0 = arith.constant 0 : i32
    %c0_i32_1 = arith.constant 0 : i32
    return %c0_i32, %arg0, %c0_i32_0 : i32, i32, i32
  }
}

</mosaic_0001>

<bundles_post_ra>
// kernel: tpu_custom_call.1
= control target key start
LH: loop header
LB: loop body
LE: loop exit
PB: predicated region body
PF: predicated region fallthrough
CT: control target
= control target key end

     0   :  { %8 = vsyncpa [#allocation3], 0  ;;  %s1195_s0 = inlined_call_operand.hbm [shape: f32[8,32], index: 0, kind: input, shape index: {}]   ;;  %s1196_s1 = inlined_call_operand.hbm [shape: f32[8,32,32], index: 1, kind: input, shape index: {}]   ;;  %s1197_s2 = inlined_call_operand.hbm [shape: f32[8,1,32], index: 2, kind: input, shape index: {}]   ;;  %s1198_s3 = inlined_call_operand.hbm [shape: f32[2,8,32], index: 3, kind: output, shape index: {}]  }
   0x1   :  { %9 = vsyncpa [#allocation6], 0 }
   0x2   :  { %10 = vsyncpa [#allocation4], 0  ;;  %s1068_s12 = smov [#allocation5]   ;;  %s974_s16 = scalar_lea.hbm %s1196_s1, 4096 }
   0x3   :  { %s26_s13 = sshll.u32 %s1068_s12, 4  ;;  %p975_p0 = scmp.ne.s32.totalorder %s1196_s1, %s974_s16  ;;  %s27_s13 = int_to_ptr.vmem [resolvable:$true] %s26_s13 }
   0x4   :  { %p978_p1 = scmp.lt.u32.totalorder %s974_s16, %s1196_s1 }
   0x6   :  { %p980_p2 = pnand %p978_p1, %p975_p0 }
   0x8   :  { %983 = shalt.err (!%p980_p2)
}
   0x9   :  { %s984_s21 = scalar_lea.vmem %s27_s13, 4096  ;;  %p989_p4 = scmp.lt.s32.totalorder %s27_s13, %s27_s13 }
   0xa   :  { %p985_p3 = scmp.ne.s32.totalorder %s27_s13, %s984_s21  ;;  %p990_p5 = scmp.lt.s32.totalorder %s984_s21, %s984_s21 }
   0xc   :  { %p991_p6 = por %p990_p5, %p989_p4 }
   0xe   :  { %p992_p7 = pnand %p991_p6, %p985_p3 }
  0x10   :  { %995 = shalt.err (!%p992_p7)
}
  0x11   :  { %s1069_s22 = smov 128   ;;  %s1070_s23 = smov 8  }
  0x12   :  { %32 = dma.hbm_to_vmem [thread:$0]  %s1196_s1, 4096, %s27_s13, [#allocation6], %s1069_s22, %s1069_s22, %s1070_s23  }
  0x13   :  { %s1071_s26 = smov [#allocation2]   ;;  %s1072_s28 = smov [#allocation7]  }
  0x14   :  { %s17_s27 = sshll.u32 %s1071_s26, 4  ;;  %s38_s29 = sshll.u32 %s1072_s28, 4  ;;  %s18_s27 = int_to_ptr.vmem [resolvable:$true] %s17_s27  ;;  %s39_s29 = int_to_ptr.vmem [resolvable:$true] %s38_s29 }
  0x15   :  { %s996_s5 = scalar_lea.hbm %s1195_s0, 128 }
  0x16   :  { %p997_p8 = scmp.ne.s32.totalorder %s1195_s0, %s996_s5  ;;  %p1000_p9 = scmp.lt.u32.totalorder %s996_s5, %s1195_s0 }
  0x18   :  { %p1002_p10 = pnand %p1000_p9, %p997_p8 }
  0x1a   :  { %1005 = shalt.err (!%p1002_p10)
}
  0x1b   :  { %s1006_s1 = scalar_lea.vmem %s18_s27, 128  ;;  %p1011_p12 = scmp.lt.s32.totalorder %s18_s27, %s18_s27 }
  0x1c   :  { %p1007_p11 = scmp.ne.s32.totalorder %s18_s27, %s1006_s1  ;;  %p1012_p13 = scmp.lt.s32.totalorder %s1006_s1, %s1006_s1 }
  0x1e   :  { %p1013_p0 = por %p1012_p13, %p1011_p12 }
  0x20   :  { %p1014_p1 = pnand %p1013_p0, %p1007_p11 }
  0x22   :  { %1017 = shalt.err (!%p1014_p1)
}
  0x23   :  { %20 = dma.hbm_to_vmem [thread:$0]  %s1195_s0, 128, %s18_s27, [#allocation3]  }
  0x24   :  { %s1018_s14 = scalar_lea.hbm %s1197_s2, 128 }
  0x25   :  { %p1019_p2 = scmp.ne.s32.totalorder %s1197_s2, %s1018_s14  ;;  %p1022_p3 = scmp.lt.u32.totalorder %s1018_s14, %s1197_s2 }
  0x27   :  { %p1024_p4 = pnand %p1022_p3, %p1019_p2 }
  0x29   :  { %1027 = shalt.err (!%p1024_p4)
}
  0x2a   :  { %s1028_s19 = scalar_lea.vmem %s39_s29, 128  ;;  %p1033_p6 = scmp.lt.s32.totalorder %s39_s29, %s39_s29 }
  0x2b   :  { %p1029_p5 = scmp.ne.s32.totalorder %s39_s29, %s1028_s19  ;;  %p1034_p7 = scmp.lt.s32.totalorder %s1028_s19, %s1028_s19 }
  0x2d   :  { %p1035_p8 = por %p1034_p7, %p1033_p6 }
  0x2f   :  { %p1036_p9 = pnand %p1035_p8, %p1029_p5 }
  0x31   :  { %1039 = shalt.err (!%p1036_p9)
}
  0x32   :  { %s1073_s0 = smov 16   ;;  %s1074_s20 = smov 1  }
  0x33   :  { %44 = dma.hbm_to_vmem [thread:$0]  %s1197_s2, 128, %s39_s29, [#allocation6], %s1073_s0, %s1073_s0, %s1074_s20  }
  0x34   :  { %1062 = dma.done.wait [#allocation3], 128  }
  0x35   :  { %1063 = vsyncadd [#allocation3], 4294967168 }
  0x36   :  { %1064 = dma.done.wait [#allocation6], 4224  }
  0x37   :  { %1065 = vsyncadd [#allocation6], 4294963072  ;;  %v1075_v0 = vmov 0.0|0.0   ;;  %vm1076_vm0 = vmmov 0   ;;  %v1077_v1 = vmov 0.0   ;;  %v55_v2 = vld [vmem:[#allocation5] sm:$0xff] }
  0x38   :  { %915 = vmatprep.subr.bf16.mxu0 %v1075_v0  ;;  %835 = vmatprep.mubr.msk.f32.mxu0 %vm1076_vm0, %v1077_v1  ;;  %v56_v3 = vld [vmem:[#allocation5 + $0x8] sm:$0xff]  ;;  %v57_v4 = vld [vmem:[#allocation5 + $0x10] sm:$0xff]  ;;  %v58_v6 = vld [vmem:[#allocation5 + $0x18] sm:$0xff]  ;;  %vm66_vm1 = vcmask 261120   ;;  %s1078_s2 = smov [#allocation8]  }
  0x39   :  { %921 = vmatprep.subr.bf16.mxu1 %v1075_v0  ;;  %846 = vmatprep.mubr.msk.f32.mxu1 %vm1076_vm0, %v1077_v1  ;;  %v916_v5 = vpack.c.bf16 %v56_v3, %v55_v2  ;;  %v142_v7 = vld [vmem:[#allocation5 + $0x20] sm:$0xff]  ;;  %v143_v8 = vld [vmem:[#allocation5 + $0x28] sm:$0xff]  ;;  %v919_v9 = vpack.c.bf16 %v58_v6, %v57_v4  ;;  %v54_v11 = vld [vmem:[#allocation2] sm:$0xff]  ;;  %s758_s25 = sshll.u32 %s1078_s2, 4  ;;  %s759_s25 = int_to_ptr.vmem [resolvable:$true] %s758_s25 }
  0x3a   :  { %v922_v10 = vpack.c.bf16 %v143_v8, %v142_v7  ;;  %v144_v12 = vld [vmem:[#allocation5 + $0x30] sm:$0xff]  ;;  %v145_v13 = vld [vmem:[#allocation5 + $0x38] sm:$0xff]  ;;  %v229_v15 = vld [vmem:[#allocation5 + $0x40] sm:$0xff]  ;;  %s1040_s26 = scalar_lea.vmem %s759_s25, 256  ;;  %p1045_p11 = scmp.lt.s32.totalorder %s759_s25, %s759_s25 }
  0x3b   :  { %917 = vmatpush3.bf16.msra.mxu0 %v916_v5  ;;  %v925_v14 = vpack.c.bf16 %v145_v13, %v144_v12  ;;  %v230_v16 = vld [vmem:[#allocation5 + $0x48] sm:$0xff]  ;;  %v771_v18 = vld [vmem:[#allocation7] ss:$0 sm:$0xff]  ;;  %v231_v23 = vld [vmem:[#allocation5 + $0x50] sm:$0xff]  ;;  %p1041_p10 = scmp.ne.s32.totalorder %s759_s25, %s1040_s26  ;;  %p1046_p12 = scmp.lt.s32.totalorder %s1040_s26, %s1040_s26 }
  0x3c   :  { %918 = vmatprep.subr.bf16.mxu0 %v1075_v0  ;;  %923 = vmatpush3.bf16.msra.mxu1 %v922_v10  ;;  %v928_v17 = vpack.c.bf16 %v230_v16, %v229_v15  ;;  %v232_v24 = vld [vmem:[#allocation5 + $0x58] sm:$0xff]  ;;  %v316_v26 = vld [vmem:[#allocation5 + $0x60] sm:$0xff]  ;;  %v317_v27 = vld [vmem:[#allocation5 + $0x68] sm:$0xff] }
  0x3d   :  { %924 = vmatprep.subr.bf16.mxu1 %v1075_v0  ;;  %v931_v25 = vpack.c.bf16 %v232_v24, %v231_v23  ;;  %v934_v28 = vpack.c.bf16 %v317_v27, %v316_v26  ;;  %v773_v29 = vld [vmem:[#allocation7 + $0x1] ss:$0 sm:$0xff]  ;;  %v318_v34 = vld [vmem:[#allocation5 + $0x70] sm:$0xff]  ;;  %v319_v35 = vld [vmem:[#allocation5 + $0x78] sm:$0xff]  ;;  %p1047_p13 = por %p1046_p12, %p1045_p11 }
  0x3e   :  { %v937_v36 = vpack.c.bf16 %v319_v35, %v318_v34  ;;  %v403_v37 = vld [vmem:[#allocation5 + $0x80] sm:$0xff]  ;;  %v404_v38 = vld [vmem:[#allocation5 + $0x88] sm:$0xff]  ;;  %v405_v45 = vld [vmem:[#allocation5 + $0x90] sm:$0xff] }
  0x3f   :  { %920 = vmatpush3.bf16.msra.mxu0 %v919_v9  ;;  %v940_v39 = vpack.c.bf16 %v404_v38, %v403_v37  ;;  %v775_v40 = vld [vmem:[#allocation7 + $0x2] ss:$0 sm:$0xff]  ;;  %v406_v46 = vld [vmem:[#allocation5 + $0x98] sm:$0xff]  ;;  %v491_v49 = vld [vmem:[#allocation5 + $0xa8] sm:$0xff]  ;;  %p1048_p0 = pnand %p1047_p13, %p1041_p10 }
  0x40   :  { %927 = vmatprep.subr.bf16.mxu0 %v1075_v0  ;;  %926 = vmatpush3.bf16.msra.mxu1 %v925_v14  ;;  %v943_v47 = vpack.c.bf16 %v406_v46, %v405_v45  ;;  %v490_v48 = vld [vmem:[#allocation5 + $0xa0] sm:$0xff]  ;;  %v492_v56 = vld [vmem:[#allocation5 + $0xb0] sm:$0xff]  ;;  %v493_v57 = vld [vmem:[#allocation5 + $0xb8] sm:$0xff] }
  0x41   :  { %933 = vmatprep.subr.bf16.mxu1 %v1075_v0  ;;  %v946_v50 = vpack.c.bf16 %v491_v49, %v490_v48  ;;  %v777_v51 = vld [vmem:[#allocation7 + $0x3] ss:$0 sm:$0xff]  ;;  %v949_v58 = vpack.c.bf16 %v493_v57, %v492_v56  ;;  %v578_v60 = vld [vmem:[#allocation5 + $0xc8] sm:$0xff]  ;;  %v779_v62 = vld [vmem:[#allocation7 + $0x4] ss:$0 sm:$0xff] }
  0x42   :  { %836 = vmatmul.mubr.msk.f32.vlgmr.msra.gmra.mrb[0].mxu0 %vm66_vm1, %v54_v11  ;;  %v577_v59 = vld [vmem:[#allocation5 + $0xc0] sm:$0xff]  ;;  %v579_v5 = vld [vmem:[#allocation5 + $0xd0] sm:$0xff]  ;;  %v580_v6 = vld [vmem:[#allocation5 + $0xd8] sm:$0xff] }
  0x43   :  { %857 = vmatprep.mubr.msk.f32.mxu0 %vm1076_vm0, %v1077_v1  ;;  %929 = vmatpush3.bf16.msra.mxu0 %v928_v17  ;;  %v952_v61 = vpack.c.bf16 %v578_v60, %v577_v59  ;;  %v955_v7 = vpack.c.bf16 %v580_v6, %v579_v5  ;;  %v664_v8 = vld [vmem:[#allocation5 + $0xe0] sm:$0xff]  ;;  %v665_v9 = vld [vmem:[#allocation5 + $0xe8] sm:$0xff]  ;;  %v666_v16 = vld [vmem:[#allocation5 + $0xf0] sm:$0xff] }
  0x44   :  { %930 = vmatprep.subr.bf16.mxu0 %v1075_v0  ;;  %v958_v10 = vpack.c.bf16 %v665_v9, %v664_v8  ;;  %v781_v11 = vld [vmem:[#allocation7 + $0x5] ss:$0 sm:$0xff]  ;;  %v667_v17 = vld [vmem:[#allocation5 + $0xf8] sm:$0xff]  ;;  %v785_v23 = vld [vmem:[#allocation7 + $0x7] ss:$0 sm:$0xff] }
  0x47   :  { %932 = vmatpush3.bf16.msra.mxu0 %v931_v25 }
  0x48   :  { %939 = vmatprep.subr.bf16.mxu0 %v1075_v0 }
 0x115   :  { %v136_v19 = vpop.f32.mrb[0].mxu0 }
 0x116   :  { %v137_v20 = vadd.f32 %v771_v18, %v136_v19  ;;  %v837_v21 = vpop.f32.mrb[1].mxu0  ;;  %v783_v18 = vld [vmem:[#allocation7 + $0x6] ss:$0 sm:$0xff] }
 0x118   :  { %v140_v22 = vmax.f32 %v137_v20, 0.0 }
 0x11a   :  { %847 = vmatmul.mubr.msk.f32.vlgmr.msra.gmra.mrb[0].mxu1 %vm66_vm1, %v140_v22 }
 0x11b   :  { %868 = vmatprep.mubr.msk.f32.mxu1 %vm1076_vm0, %v1077_v1  ;;  %935 = vmatpush3.bf16.msra.mxu1 %v934_v28 }
 0x11c   :  { %936 = vmatprep.subr.bf16.mxu1 %v1075_v0 }
 0x11f   :  { %938 = vmatpush3.bf16.msra.mxu1 %v937_v36 }
 0x120   :  { %945 = vmatprep.subr.bf16.mxu1 %v1075_v0 }
 0x1ed   :  { %v223_v30 = vpop.f32.mrb[0].mxu1 }
 0x1ee   :  { %v224_v31 = vadd.f32 %v773_v29, %v223_v30  ;;  %v848_v32 = vpop.f32.mrb[1].mxu1 }
 0x1f0   :  { %v227_v33 = vmax.f32 %v224_v31, 0.0 }
 0x1f2   :  { %858 = vmatmul.mubr.msk.f32.vlgmr.msra.gmra.mrb[2].mxu0 %vm66_vm1, %v227_v33 }
 0x1f3   :  { %879 = vmatprep.mubr.msk.f32.mxu0 %vm1076_vm0, %v1077_v1  ;;  %941 = vmatpush3.bf16.msra.mxu0 %v940_v39 }
 0x1f4   :  { %942 = vmatprep.subr.bf16.mxu0 %v1075_v0 }
 0x1f7   :  { %944 = vmatpush3.bf16.msra.mxu0 %v943_v47 }
 0x1f8   :  { %951 = vmatprep.subr.bf16.mxu0 %v1075_v0 }
 0x2c5   :  { %v310_v41 = vpop.f32.mrb[2].mxu0 }
 0x2c6   :  { %v311_v42 = vadd.f32 %v775_v40, %v310_v41  ;;  %v859_v43 = vpop.f32.mrb[3].mxu0 }
 0x2c8   :  { %v314_v44 = vmax.f32 %v311_v42, 0.0 }
 0x2ca   :  { %869 = vmatmul.mubr.msk.f32.vlgmr.msra.gmra.mrb[2].mxu1 %vm66_vm1, %v314_v44 }
 0x2cb   :  { %890 = vmatprep.mubr.msk.f32.mxu1 %vm1076_vm0, %v1077_v1  ;;  %947 = vmatpush3.bf16.msra.mxu1 %v946_v50 }
 0x2cc   :  { %948 = vmatprep.subr.bf16.mxu1 %v1075_v0 }
 0x2cf   :  { %950 = vmatpush3.bf16.msra.mxu1 %v949_v58 }
 0x2d0   :  { %957 = vmatprep.subr.bf16.mxu1 %v1075_v0 }
 0x39d   :  { %v397_v52 = vpop.f32.mrb[2].mxu1 }
 0x39e   :  { %v398_v53 = vadd.f32 %v777_v51, %v397_v52  ;;  %v870_v54 = vpop.f32.mrb[3].mxu1 }
 0x3a0   :  { %v401_v55 = vmax.f32 %v398_v53, 0.0 }
 0x3a2   :  { %880 = vmatmul.mubr.msk.f32.vlgmr.msra.gmra.mrb[4].mxu0 %vm66_vm1, %v401_v55 }
 0x3a3   :  { %901 = vmatprep.mubr.msk.f32.mxu0 %vm1076_vm0, %v1077_v1  ;;  %953 = vmatpush3.bf16.msra.mxu0 %v952_v61 }
 0x3a4   :  { %954 = vmatprep.subr.bf16.mxu0 %v1075_v0 }
 0x3a7   :  { %956 = vmatpush3.bf16.msra.mxu0 %v955_v7 }
 0x475   :  { %v484_v63 = vpop.f32.mrb[4].mxu0 }
 0x476   :  { %v485_v2 = vadd.f32 %v779_v62, %v484_v63  ;;  %v881_v3 = vpop.f32.mrb[5].mxu0 }
 0x478   :  { %v488_v4 = vmax.f32 %v485_v2, 0.0 }
 0x47a   :  { %891 = vmatmul.mubr.msk.f32.vlgmr.msra.gmra.mrb[4].mxu1 %vm66_vm1, %v488_v4 }
 0x47b   :  { %912 = vmatprep.mubr.msk.f32.mxu1 %vm1076_vm0, %v1077_v1  ;;  %959 = vmatpush3.bf16.msra.mxu1 %v958_v10  ;;  %v961_v1 = vpack.c.bf16 %v667_v17, %v666_v16 }
 0x47c   :  { %960 = vmatprep.subr.bf16.mxu1 %v1075_v0 }
 0x47f   :  { %962 = vmatpush3.bf16.msra.mxu1 %v961_v1 }
 0x54d   :  { %v571_v12 = vpop.f32.mrb[4].mxu1 }
 0x54e   :  { %v572_v13 = vadd.f32 %v781_v11, %v571_v12  ;;  %v892_v14 = vpop.f32.mrb[5].mxu1 }
 0x550   :  { %v575_v15 = vmax.f32 %v572_v13, 0.0 }
 0x552   :  { %902 = vmatmul.mubr.msk.f32.vlgmr.msra.gmra.mrb[6].mxu0 %vm66_vm1, %v575_v15 }
 0x625   :  { %v658_v19 = vpop.f32.mrb[6].mxu0 }
 0x626   :  { %v659_v20 = vadd.f32 %v783_v18, %v658_v19  ;;  %v903_v21 = vpop.f32.mrb[7].mxu0 }
 0x628   :  { %v662_v22 = vmax.f32 %v659_v20, 0.0 }
 0x62a   :  { %913 = vmatmul.mubr.msk.f32.vlgmr.msra.gmra.mrb[6].mxu1 %vm66_vm1, %v662_v22 }
 0x6fd   :  { %v745_v0 = vpop.f32.mrb[6].mxu1 }
 0x6fe   :  { %v746_v24 = vadd.f32 %v785_v23, %v745_v0  ;;  %v914_v25 = vpop.f32.mrb[7].mxu1 }
 0x700   :  { %v749_v26 = vmax.f32 %v746_v24, 0.0 }
 0x702   :  { %750 = vst.msk [vmem:[#allocation8] sm:$0xff] %vm66_vm1, %v749_v26  ;;  %752 = vst.msk [vmem:[#allocation8 + $0x8] sm:$0xff] %vm66_vm1, %v749_v26 }
 0x703   :  { %1051 = shalt.err (!%p1048_p0)
}
 0x704   :  { %s1052_s29 = scalar_lea.hbm %s1198_s3, 256 }
 0x705   :  { %p1053_p1 = scmp.ne.s32.totalorder %s1198_s3, %s1052_s29  ;;  %p1056_p2 = scmp.lt.u32.totalorder %s1052_s29, %s1198_s3 }
 0x707   :  { %p1058_p3 = pnand %p1056_p2, %p1053_p1 }
 0x709   :  { %1061 = shalt.err (!%p1058_p3)
}
 0x70a   :  { %764 = dma.vmem_to_hbm [thread:$0]  %s759_s25, 256, %s1198_s3, [#allocation4], %s1069_s22, %s1069_s22, %s1070_s23  }
 0x70b   :  { %1066 = dma.done.wait [#allocation4], 256  }
 0x70c   :  { %1067 = vsyncadd [#allocation4], 4294967040 }
 0x70d   :  { %768 = vsyncpa [#allocation3], 1 }
 0x70e   :  { %769 = vsyncpa [#allocation6], 1 }
 0x70f   :  { %770 = vsyncpa [#allocation4], 1 }

</bundles_post_ra>
